<compile_context>
chip_gen: v7x
topology: tpu7x:2x2x1
jax: 0.10.0
libtpu: 0.0.40
codegen_flags: <defaults>
</compile_context>

<pallas_src>
import jax
import jax.numpy as jnp
from jax.experimental import pallas as pl
from jax.experimental.pallas import tpu as pltpu


def attention_kernel(emb_ref, w_ref, b_ref, ctx_ref,
                     w1_ref, b1_ref, w2_ref, b2_ref, out_ref):
    TB, S, D = emb_ref.shape
    emb = emb_ref[...]                                               # (TB, S, D)

    # u = tanh(X W + b): one big MXU matmul for the whole batch block.
    emb2 = emb.reshape(TB * S, D)
    u = jnp.tanh(
        jnp.dot(emb2, w_ref[...], preferred_element_type=jnp.float32)
        + b_ref[...]                                                 # bias applied once per block
    )                                                                # (TB*S, D)

    # Attention logits: VPU multiply + cross-lane reduce against the (1, D)
    # context row instead of an N=1 MXU matmul.
    s = jnp.tanh(jnp.sum(u * ctx_ref[...], axis=-1, keepdims=True))  # (TB*S, 1)
    s = s.reshape(TB, S, 1)

    # Softmax over the sequence (sublane) axis, per batch row.
    m = jnp.max(s, axis=1, keepdims=True)                            # (TB, 1, 1)
    e = jnp.exp(s - m)
    alpha = e / jnp.sum(e, axis=1, keepdims=True)                    # (TB, S, 1)

    # Weighted sum of the ORIGINAL embedding (element_wise_mul semantics).
    pooled = jnp.sum(alpha * emb, axis=1)                            # (TB, D)

    # Batched classifier: Linear -> ReLU -> Linear -> Sigmoid (bin_label=True).
    h = jnp.maximum(
        jnp.dot(pooled, w1_ref[...], preferred_element_type=jnp.float32)
        + b1_ref[...],
        0.0,
    )                                                                # (TB, H)
    logits = (
        jnp.dot(h, w2_ref[...], preferred_element_type=jnp.float32) + b2_ref[...]
    )                                                                # (TB, D_out)
    out_ref[...] = jax.nn.sigmoid(logits)


def _pick_batch_tile(B):
    """Batch rows per grid step.

    Small batches go in a single block (block dims equal to the full array
    extent are exempt from the (8, 128) rule).  Larger batches use
    8-row-aligned tiles so the (TB, D_out) output block tiles cleanly, sized to
    give v7x's two TensorCores at least two parallel blocks.
    """
    if B <= 16:
        return B
    tb = min(128, pl.cdiv(B, 2))
    tb = max(8, (tb // 8) * 8)
    return tb


def attention_forward(numerical, embedding, params):
    # `numerical` is unused (matches the PyTorch forward).
    del numerical
    W, b, ctx, W1, b1, W2, b2 = params
    B, S, D = embedding.shape
    H = W1.shape[1]
    D_out = W2.shape[1]

    TB = _pick_batch_tile(B)
    num_blocks = pl.cdiv(B, TB)
    B_pad = num_blocks * TB
    if B_pad != B:
        embedding = jnp.pad(embedding, ((0, B_pad - B), (0, 0), (0, 0)))

    ctx_row = ctx.reshape(1, D)      # (D, 1) -> (1, D) row for the VPU reduce

    out = pl.pallas_call(
        attention_kernel,
        out_shape=jax.ShapeDtypeStruct((B_pad, D_out), jnp.float32),
        grid=(num_blocks,),
        in_specs=[
            pl.BlockSpec((TB, S, D), lambda i: (i, 0, 0)),   # embedding batch block
            pl.BlockSpec((D, D), lambda i: (0, 0)),          # attention weight
            pl.BlockSpec((1, D), lambda i: (0, 0)),          # attention bias
            pl.BlockSpec((1, D), lambda i: (0, 0)),          # context weight (row form)
            pl.BlockSpec((D, H), lambda i: (0, 0)),          # classifier Linear1 W
            pl.BlockSpec((1, H), lambda i: (0, 0)),          # classifier Linear1 b
            pl.BlockSpec((H, D_out), lambda i: (0, 0)),      # classifier Linear2 W
            pl.BlockSpec((1, D_out), lambda i: (0, 0)),      # classifier Linear2 b
        ],
        out_specs=pl.BlockSpec((TB, D_out), lambda i: (i, 0)),
        compiler_params=pltpu.CompilerParams(
            dimension_semantics=("parallel",),
        ),
    )(embedding, W, b, ctx_row, W1, b1, W2, b2)
    return out[:B]                                           # (B, D_out)


def reference_forward(embedding, params):
    # Pure-JAX reference mirroring the PyTorch code, for correctness checking.
    W, b, ctx, W1, b1, W2, b2 = params
    u = jnp.tanh(jnp.einsum("bsd,de->bse", embedding, W) + b)     # (B, S, D)
    a = jnp.tanh(jnp.einsum("bsd,do->bso", u, ctx))[..., 0]       # (B, S)
    alpha = jax.nn.softmax(a, axis=1)                             # (B, S)
    pooled = jnp.einsum("bs,bsd->bd", alpha, embedding)           # (B, D)
    h = jnp.maximum(pooled @ W1 + b1, 0.0)
    return jax.nn.sigmoid(h @ W2 + b2)


if __name__ == "__main__":
    # Module hyperparameters (small, consistent with the forward pass):
    hidden_size = 16           # => 2*hidden_size = 32 feature dim
    D = 2 * hidden_size        # classifier D_in must equal 2*hidden_size
    H_cls = 32                 # classifier hidden width H
    D_out = 4
    B, S = 2, 8

    key = jax.random.PRNGKey(0)
    k = jax.random.split(key, 9)

    # Attention parameters: normal(mean=0, std=0.05), as in _create_weights.
    W_attn = 0.05 * jax.random.normal(k[0], (D, D), jnp.float32)
    b_attn = 0.05 * jax.random.normal(k[1], (1, D), jnp.float32)
    ctx_w = 0.05 * jax.random.normal(k[2], (D, 1), jnp.float32)
    # Classifier parameters (deterministic synthetic init).
    W1 = 0.1 * jax.random.normal(k[3], (D, H_cls), jnp.float32)
    b1 = 0.1 * jax.random.normal(k[4], (1, H_cls), jnp.float32)
    W2 = 0.1 * jax.random.normal(k[5], (H_cls, D_out), jnp.float32)
    b2 = 0.1 * jax.random.normal(k[6], (1, D_out), jnp.float32)
    params = (W_attn, b_attn, ctx_w, W1, b1, W2, b2)

    # Inputs.
    embedding = jax.random.normal(k[7], (B, S, D), jnp.float32)    # (B, S, 2H)
    numerical = jax.random.normal(k[8], (B, 5), jnp.float32)       # unused by forward

    out = attention_forward(numerical, embedding, params)
    out = jax.block_until_ready(out)

    ref = reference_forward(embedding, params)
    assert out.shape == (B, D_out)
    assert jnp.allclose(out, ref, atol=1e-5, rtol=1e-5), "mismatch vs JAX reference"

    print("KERNEL_OK")
</pallas_src>

<mosaic_0001>
module attributes {stable_mosaic.version = 11 : i64} {
  func.func @attention_kernel(%arg0: i32, %arg1: memref<2x8x32xf32, #tpu.memory_space<vmem>>, %arg2: memref<32x32xf32, #tpu.memory_space<vmem>>, %arg3: memref<1x32xf32, #tpu.memory_space<vmem>>, %arg4: memref<1x32xf32, #tpu.memory_space<vmem>>, %arg5: memref<32x32xf32, #tpu.memory_space<vmem>>, %arg6: memref<1x32xf32, #tpu.memory_space<vmem>>, %arg7: memref<32x4xf32, #tpu.memory_space<vmem>>, %arg8: memref<1x4xf32, #tpu.memory_space<vmem>>, %arg9: memref<2x4xf32, #tpu.memory_space<vmem>>) attributes {dimension_semantics = [#tpu.dimension_semantics<parallel>], iteration_bounds = array<i64: 1>, scalar_prefetch = 0 : i64, scratch_operands = 0 : i64, tpu.core_type = #tpu.core_type<tc>, window_params = [{transform_indices = @transform_0, window_bounds = array<i64: 2, 8, 32>}, {pipeline_mode = #tpu.pipeline_mode<synchronous>, transform_indices = @transform_1, window_bounds = array<i64: 32, 32>}, {pipeline_mode = #tpu.pipeline_mode<synchronous>, transform_indices = @transform_2, window_bounds = array<i64: 1, 32>}, {pipeline_mode = #tpu.pipeline_mode<synchronous>, transform_indices = @transform_3, window_bounds = array<i64: 1, 32>}, {pipeline_mode = #tpu.pipeline_mode<synchronous>, transform_indices = @transform_4, window_bounds = array<i64: 32, 32>}, {pipeline_mode = #tpu.pipeline_mode<synchronous>, transform_indices = @transform_5, window_bounds = array<i64: 1, 32>}, {pipeline_mode = #tpu.pipeline_mode<synchronous>, transform_indices = @transform_6, window_bounds = array<i64: 32, 4>}, {pipeline_mode = #tpu.pipeline_mode<synchronous>, transform_indices = @transform_7, window_bounds = array<i64: 1, 4>}, {transform_indices = @transform_8, window_bounds = array<i64: 2, 4>}]} {
    %c0 = arith.constant 0 : index
    %c0_0 = arith.constant 0 : index
    %c0_1 = arith.constant 0 : index
    %0 = vector.load %arg1[%c0, %c0_0, %c0_1] : memref<2x8x32xf32, #tpu.memory_space<vmem>>, vector<2x8x32xf32>
    %1 = vector.shape_cast %0 : vector<2x8x32xf32> to vector<16x32xf32>
    %c0_2 = arith.constant 0 : index
    %c0_3 = arith.constant 0 : index
    %2 = vector.load %arg2[%c0_2, %c0_3] : memref<32x32xf32, #tpu.memory_space<vmem>>, vector<32x32xf32>
    %cst = arith.constant dense<0.000000e+00> : vector<16x32xf32>
    %3 = tpu.matmul %1, %2, %cst {dimension_numbers = #tpu.dot_dimension_numbers<[1], [0], [0], [1], [0, 0, 1, 1], [], []>} : vector<16x32xf32>, vector<32x32xf32>, vector<16x32xf32> -> vector<16x32xf32>
    %c0_4 = arith.constant 0 : index
    %c0_5 = arith.constant 0 : index
    %4 = vector.load %arg3[%c0_4, %c0_5] : memref<1x32xf32, #tpu.memory_space<vmem>>, vector<1x32xf32>
    %5 = vector.broadcast %4 : vector<1x32xf32> to vector<16x32xf32>
    %6 = arith.addf %3, %5 : vector<16x32xf32>
    %7 = math.tanh %6 : vector<16x32xf32>
    %c0_6 = arith.constant 0 : index
    %c0_7 = arith.constant 0 : index
    %8 = vector.load %arg4[%c0_6, %c0_7] : memref<1x32xf32, #tpu.memory_space<vmem>>, vector<1x32xf32>
    %9 = vector.broadcast %8 : vector<1x32xf32> to vector<16x32xf32>
    %10 = arith.mulf %7, %9 : vector<16x32xf32>
    %cst_8 = arith.constant dense<0.000000e+00> : vector<16xf32>
    %11 = vector.multi_reduction <add>, %10, %cst_8 [1] : vector<16x32xf32> to vector<16xf32>
    %12 = vector.shape_cast %11 : vector<16xf32> to vector<16x1xf32>
    %13 = math.tanh %12 : vector<16x1xf32>
    %14 = vector.shape_cast %13 : vector<16x1xf32> to vector<2x8x1xf32>
    %cst_9 = arith.constant dense<0xFF800000> : vector<2x1xf32>
    %15 = vector.multi_reduction <maximumf>, %14, %cst_9 [1] : vector<2x8x1xf32> to vector<2x1xf32>
    %16 = vector.shape_cast %15 : vector<2x1xf32> to vector<2x1x1xf32>
    %17 = vector.broadcast %16 : vector<2x1x1xf32> to vector<2x8x1xf32>
    %18 = arith.subf %14, %17 : vector<2x8x1xf32>
    %19 = math.exp %18 : vector<2x8x1xf32>
    %cst_10 = arith.constant dense<0.000000e+00> : vector<2x1xf32>
    %20 = vector.multi_reduction <add>, %19, %cst_10 [1] : vector<2x8x1xf32> to vector<2x1xf32>
    %21 = vector.shape_cast %20 : vector<2x1xf32> to vector<2x1x1xf32>
    %22 = vector.broadcast %21 : vector<2x1x1xf32> to vector<2x8x1xf32>
    %23 = arith.divf %19, %22 : vector<2x8x1xf32>
    %24 = vector.broadcast %23 : vector<2x8x1xf32> to vector<2x8x32xf32>
    %25 = arith.mulf %24, %0 : vector<2x8x32xf32>
    %cst_11 = arith.constant dense<0.000000e+00> : vector<2x32xf32>
    %26 = vector.multi_reduction <add>, %25, %cst_11 [1] : vector<2x8x32xf32> to vector<2x32xf32>
    %c0_12 = arith.constant 0 : index
    %c0_13 = arith.constant 0 : index
    %27 = vector.load %arg5[%c0_12, %c0_13] : memref<32x32xf32, #tpu.memory_space<vmem>>, vector<32x32xf32>
    %cst_14 = arith.constant dense<0.000000e+00> : vector<2x32xf32>
    %28 = tpu.matmul %26, %27, %cst_14 {dimension_numbers = #tpu.dot_dimension_numbers<[1], [0], [0], [1], [0, 0, 1, 1], [], []>} : vector<2x32xf32>, vector<32x32xf32>, vector<2x32xf32> -> vector<2x32xf32>
    %c0_15 = arith.constant 0 : index
    %c0_16 = arith.constant 0 : index
    %29 = vector.load %arg6[%c0_15, %c0_16] : memref<1x32xf32, #tpu.memory_space<vmem>>, vector<1x32xf32>
    %30 = vector.broadcast %29 : vector<1x32xf32> to vector<2x32xf32>
    %31 = arith.addf %28, %30 : vector<2x32xf32>
    %cst_17 = arith.constant 0.000000e+00 : f32
    %32 = vector.broadcast %cst_17 : f32 to vector<2x32xf32>
    %33 = arith.maximumf %31, %32 : vector<2x32xf32>
    %c0_18 = arith.constant 0 : index
    %c0_19 = arith.constant 0 : index
    %34 = vector.load %arg7[%c0_18, %c0_19] : memref<32x4xf32, #tpu.memory_space<vmem>>, vector<32x4xf32>
    %cst_20 = arith.constant dense<0.000000e+00> : vector<2x4xf32>
    %35 = tpu.matmul %33, %34, %cst_20 {dimension_numbers = #tpu.dot_dimension_numbers<[1], [0], [0], [1], [0, 0, 1, 1], [], []>} : vector<2x32xf32>, vector<32x4xf32>, vector<2x4xf32> -> vector<2x4xf32>
    %c0_21 = arith.constant 0 : index
    %c0_22 = arith.constant 0 : index
    %36 = vector.load %arg8[%c0_21, %c0_22] : memref<1x4xf32, #tpu.memory_space<vmem>>, vector<1x4xf32>
    %37 = vector.broadcast %36 : vector<1x4xf32> to vector<2x4xf32>
    %38 = arith.addf %35, %37 : vector<2x4xf32>
    %39 = arith.negf %38 : vector<2x4xf32>
    %40 = math.exp %39 : vector<2x4xf32>
    %cst_23 = arith.constant 1.000000e+00 : f32
    %41 = vector.broadcast %cst_23 : f32 to vector<2x4xf32>
    %42 = arith.addf %41, %40 : vector<2x4xf32>
    %43 = arith.divf %41, %42 : vector<2x4xf32>
    %c0_24 = arith.constant 0 : index
    %c0_25 = arith.constant 0 : index
    %44 = vector.load %arg9[%c0_24, %c0_25] : memref<2x4xf32, #tpu.memory_space<vmem>>, vector<2x4xf32>
    tpu.vector_store %arg9[%c0_24, %c0_25], %43 {strides = array<i32>} : memref<2x4xf32, #tpu.memory_space<vmem>>, vector<2x4xf32>,
    return
  }
  func.func @transform_0(%arg0: i32) -> (i32, i32, i32) {
    %c0_i32 = arith.constant 0 : i32
    %c0_i32_0 = arith.constant 0 : i32
    %c0_i32_1 = arith.constant 0 : i32
    return %arg0, %c0_i32, %c0_i32_0 : i32, i32, i32
  }
  func.func @transform_1(%arg0: i32) -> (i32, i32) {
    %c0_i32 = arith.constant 0 : i32
    %c0_i32_0 = arith.constant 0 : i32
    %c0_i32_1 = arith.constant 0 : i32
    return %c0_i32, %c0_i32_0 : i32, i32
  }
  func.func @transform_2(%arg0: i32) -> (i32, i32) {
    %c0_i32 = arith.constant 0 : i32
    %c0_i32_0 = arith.constant 0 : i32
    %c0_i32_1 = arith.constant 0 : i32
    return %c0_i32, %c0_i32_0 : i32, i32
  }
  func.func @transform_3(%arg0: i32) -> (i32, i32) {
    %c0_i32 = arith.constant 0 : i32
    %c0_i32_0 = arith.constant 0 : i32
    %c0_i32_1 = arith.constant 0 : i32
    return %c0_i32, %c0_i32_0 : i32, i32
  }
  func.func @transform_4(%arg0: i32) -> (i32, i32) {
    %c0_i32 = arith.constant 0 : i32
    %c0_i32_0 = arith.constant 0 : i32
    %c0_i32_1 = arith.constant 0 : i32
    return %c0_i32, %c0_i32_0 : i32, i32
  }
  func.func @transform_5(%arg0: i32) -> (i32, i32) {
    %c0_i32 = arith.constant 0 : i32
    %c0_i32_0 = arith.constant 0 : i32
    %c0_i32_1 = arith.constant 0 : i32
    return %c0_i32, %c0_i32_0 : i32, i32
  }
  func.func @transform_6(%arg0: i32) -> (i32, i32) {
    %c0_i32 = arith.constant 0 : i32
    %c0_i32_0 = arith.constant 0 : i32
    %c0_i32_1 = arith.constant 0 : i32
    return %c0_i32, %c0_i32_0 : i32, i32
  }
  func.func @transform_7(%arg0: i32) -> (i32, i32) {
    %c0_i32 = arith.constant 0 : i32
    %c0_i32_0 = arith.constant 0 : i32
    %c0_i32_1 = arith.constant 0 : i32
    return %c0_i32, %c0_i32_0 : i32, i32
  }
  func.func @transform_8(%arg0: i32) -> (i32, i32) {
    %c0_i32 = arith.constant 0 : i32
    %c0_i32_0 = arith.constant 0 : i32
    return %arg0, %c0_i32 : i32, i32
  }
}

</mosaic_0001>

<bundles_post_ra>
// kernel: tpu_custom_call.1
= control target key start
LH: loop header
LB: loop body
LE: loop exit
PB: predicated region body
PF: predicated region fallthrough
CT: control target
= control target key end

     0   :  { %13 = vsyncpa [#allocation3], 0  ;;  %s737_s0 = inlined_call_operand.hbm [shape: f32[2,8,32], index: 0, kind: input, shape index: {}]   ;;  %s738_s1 = inlined_call_operand.vmem [shape: f32[32,32], index: 1, kind: input, shape index: {}]   ;;  %s739_s2 = inlined_call_operand.vmem [shape: f32[1,32], index: 2, kind: input, shape index: {}]   ;;  %s740_s3 = inlined_call_operand.vmem [shape: f32[1,32], index: 3, kind: input, shape index: {}]   ;;  %s741_s4 = inlined_call_operand.hbm [shape: f32[32,32], index: 4, kind: input, shape index: {}]   ;;  %s742_s5 = inlined_call_operand.vmem [shape: f32[1,32], index: 5, kind: input, shape index: {}]   ;;  %s743_s6 = inlined_call_operand.vmem [shape: f32[32,4], index: 6, kind: input, shape index: {}]   ;;  %s744_s7 = inlined_call_operand.vmem [shape: f32[1,4], index: 7, kind: input, shape index: {}]   ;;  %s745_s8 = inlined_call_operand.hbm [shape: f32[2,4], index: 8, kind: output, shape index: {}]  }
   0x1   :  { %14 = vsyncpa [#allocation6], 0 }
   0x2   :  { %15 = vsyncpa [#allocation4], 0  ;;  %s596_s27 = smov [#allocation2]   ;;  %s524_s9 = scalar_lea.hbm %s737_s0, 256 }
   0x3   :  { %s21_s28 = sshll.u32 %s596_s27, 4  ;;  %p525_p0 = scmp.ne.s32.totalorder %s737_s0, %s524_s9  ;;  %s22_s28 = int_to_ptr.vmem [resolvable:$true] %s21_s28 }
   0x4   :  { %p528_p1 = scmp.lt.u32.totalorder %s524_s9, %s737_s0 }
   0x6   :  { %p530_p2 = pnand %p528_p1, %p525_p0 }
   0x8   :  { %533 = shalt.err (!%p530_p2)
}
   0x9   :  { %s534_s14 = scalar_lea.vmem %s22_s28, 256  ;;  %p539_p4 = scmp.lt.s32.totalorder %s22_s28, %s22_s28 }
   0xa   :  { %p535_p3 = scmp.ne.s32.totalorder %s22_s28, %s534_s14  ;;  %p540_p5 = scmp.lt.s32.totalorder %s534_s14, %s534_s14 }
   0xc   :  { %p541_p6 = por %p540_p5, %p539_p4 }
   0xe   :  { %p542_p7 = pnand %p541_p6, %p535_p3 }
  0x10   :  { %545 = shalt.err (!%p542_p7)
}
  0x11   :  { %s597_s15 = smov 128   ;;  %s598_s16 = smov 8  }
  0x12   :  { %27 = dma.hbm_to_vmem [thread:$0]  %s737_s0, 256, %s22_s28, [#allocation3], %s597_s15, %s597_s15, %s598_s16  }
  0x13   :  { %s599_s19 = smov [#allocation5]   ;;  %s546_s23 = scalar_lea.hbm %s741_s4, 512 }
  0x14   :  { %s39_s20 = sshll.u32 %s599_s19, 4  ;;  %p547_p8 = scmp.ne.s32.totalorder %s741_s4, %s546_s23  ;;  %s40_s20 = int_to_ptr.vmem [resolvable:$true] %s39_s20 }
  0x15   :  { %p550_p9 = scmp.lt.u32.totalorder %s546_s23, %s741_s4 }
  0x17   :  { %p552_p10 = pnand %p550_p9, %p547_p8 }
  0x19   :  { %555 = shalt.err (!%p552_p10)
}
  0x1a   :  { %s556_s29 = scalar_lea.vmem %s40_s20, 512  ;;  %p561_p12 = scmp.lt.s32.totalorder %s40_s20, %s40_s20 }
  0x1b   :  { %p557_p11 = scmp.ne.s32.totalorder %s40_s20, %s556_s29  ;;  %p562_p13 = scmp.lt.s32.totalorder %s556_s29, %s556_s29 }
  0x1d   :  { %p563_p0 = por %p562_p13, %p561_p12 }
  0x1f   :  { %p564_p1 = pnand %p563_p0, %p557_p11 }
  0x21   :  { %567 = shalt.err (!%p564_p1)
}
  0x22   :  { %45 = dma.hbm_to_vmem [thread:$0]  %s741_s4, 512, %s40_s20, [#allocation6], %s597_s15, %s597_s15, %s598_s16  }
  0x23   :  { %590 = dma.done.wait [#allocation3], 256  }
  0x24   :  { %591 = vsyncadd [#allocation3], 4294967040 }
  0x25   :  { %592 = dma.done.wait [#allocation6], 512  }
  0x26   :  { %593 = vsyncadd [#allocation6], 4294966784  ;;  %vm71_vm0 = vcmask 261120   ;;  %v60_v0 = vld [vmem:[%s738_s1] sm:$0xff]  ;;  %v61_v1 = vld [vmem:[%s738_s1 + $0x8] sm:$0xff]  ;;  %v600_v23 = vmov 0.0|0.0  }
  0x27   :  { %v62_v2 = vld [vmem:[%s738_s1 + $0x10] sm:$0xff]  ;;  %v476_v3 = vpack.c.bf16 %v61_v1, %v60_v0  ;;  %v63_v4 = vld [vmem:[%s738_s1 + $0x18] sm:$0xff]  ;;  %v685_v5 = vld [vmem:[#allocation2] sm:$0xff]  ;;  %484 = vmatprep.subr.bf16.mxu1 %v600_v23  ;;  %vm601_vm1 = vmmov 0   ;;  %v602_v26 = vmov 0.0   ;;  %vm235_vm2 = vcmask 1041409  }
  0x28   :  { %v480_v6 = vpack.c.bf16 %v63_v4, %v62_v2  ;;  %451 = vmatprep.mubr.msk.f32.mxu0 %vm71_vm0, %v685_v5  ;;  %v689_v7 = vld [vmem:[#allocation2 + $0x8] sm:$0xff]  ;;  %v418_v8 = vld [vmem:[%s739_s2] ss:$0 sm:$0xff]  ;;  %v222_v20 = vld [vmem:[#allocation5] sm:$0xff]  ;;  %462 = vmatprep.mubr.msk.f32.mxu1 %vm601_vm1, %v602_v26  ;;  %vm400_vm3 = vcmask 25600  }
  0x29   :  { %477 = vmatprep.subr.bf16.mxu0 %v476_v3  ;;  %v421_v13 = vld [vmem:[%s740_s3] ss:$0 sm:$0xff]  ;;  %v223_v21 = vld [vmem:[#allocation5 + $0x8] sm:$0xff]  ;;  %v225_v25 = vld [vmem:[#allocation5 + $0x18] sm:$0xff] }
  0x2a   :  { %479 = vmatpush3.bf16.msra.mxu0 %v476_v3  ;;  %v224_v22 = vld [vmem:[#allocation5 + $0x10] sm:$0xff]  ;;  %v485_v24 = vpack.c.bf16 %v223_v21, %v222_v20  ;;  %v311_v29 = vld [vmem:[%s743_s6 + $0x8] sm:$0xff] }
  0x2b   :  { %481 = vmatprep.subr.bf16.mxu0 %v480_v6  ;;  %v488_v27 = vpack.c.bf16 %v225_v25, %v224_v22  ;;  %v310_v28 = vld [vmem:[%s743_s6] sm:$0xff] }
  0x2c   :  { %486 = vmatpush3.bf16.msra.mxu1 %v485_v24  ;;  %v491_v30 = vpack.c.bf16 %v311_v29, %v310_v28  ;;  %v422_v25 = vld [vmem:[%s742_s5] ss:$0 sm:$0xff] }
  0x2d   :  { %487 = vmatprep.subr.bf16.mxu1 %v600_v23 }
  0x2e   :  { %483 = vmatpush3.bf16.msra.mxu0 %v480_v6 }
  0x2f   :  { %490 = vmatprep.subr.bf16.mxu0 %v600_v23 }
  0x30   :  { %489 = vmatpush3.bf16.msra.mxu1 %v488_v27 }
  0x31   :  { %452 = vmatmul.mubr.msk.f32.vlgmr.msra.gmra.mrb[0].mxu0 %vm71_vm0, %v689_v7 }
  0x32   :  { %473 = vmatprep.mubr.msk.f32.mxu0 %vm601_vm1, %v602_v26  ;;  %492 = vmatpush3.bf16.msra.mxu0 %v491_v30  ;;  %v424_v30 = vld [vmem:[%s744_s7] ss:$0 sm:$0xff] }
  0x33   :  { %493 = vmatprep.subr.bf16.mxu0 %v600_v23  ;;  %v313_v23 = vld [vmem:[%s743_s6 + $0x18] sm:$0xff] }
 0x104   :  { %v453_v9 = vpop.f32.mrb[0].mxu0 }
 0x105   :  { %v150_v10 = vadd.f32 %v453_v9, %v418_v8  ;;  %v144_v11 = vpop.f32.mrb[1].mxu0 }
 0x106   :  { %v145_v12 = vadd.f32 %v418_v8, %v144_v11 }
 0x107   :  { %504 = vtanh.f32 %v150_v10 }
 0x108   :  { %506 = vtanh.f32 %v145_v12 }
 0x111   :  { %v505_v14 = vpop.eup %504 }
 0x112   :  { %v507_v15 = vpop.eup %506  ;;  %v163_v18 = vmul.f32 %v505_v14, %v421_v13 }
 0x113   :  { %v162_v16 = vmul.f32 %v507_v15, %v421_v13 }
 0x114   :  { %v167_v19 = vsel %vm71_vm0, %v163_v18, 0.0 }
 0x115   :  { %v164_v17 = vsel %vm71_vm0, %v162_v16, 0.0 }
 0x116   :  { %165 = vadd.xlane.f32.xlu0 %v164_v17 }
 0x11a   :  { %168 = vadd.xlane.f32.xlu0 %v167_v19 }
 0x1a3   :  { %v166_v31 = vpop.xlane.xlu0 %165 }
 0x1a4   :  { %508 = vtanh.f32 %v166_v31 }
 0x1a7   :  { %v169_v32 = vpop.xlane.xlu0 %168 }
 0x1a8   :  { %510 = vtanh.f32 %v169_v32 }
 0x1ae   :  { %v509_v33 = vpop.eup %508 }
 0x1af   :  { %v172_v34 = vrot.slane %v509_v33, 4 }
 0x1b1   :  { %v173_v35 = vmax.f32 %v509_v33, %v172_v34 }
 0x1b2   :  { %v511_v36 = vpop.eup %510 }
 0x1b3   :  { %v174_v37 = vrot.slane %v173_v35, 2  ;;  %v178_v38 = vrot.slane %v511_v36, 4 }
 0x1b5   :  { %v175_v39 = vmax.f32 %v173_v35, %v174_v37  ;;  %v179_v40 = vmax.f32 %v511_v36, %v178_v38 }
 0x1b7   :  { %v176_v41 = vrot.slane %v175_v39, 1  ;;  %v180_v42 = vrot.slane %v179_v40, 2 }
 0x1b9   :  { %v177_v43 = vmax.f32 %v175_v39, %v176_v41  ;;  %v181_v44 = vmax.f32 %v179_v40, %v180_v42 }
 0x1bb   :  { %v184_v45 = vsub.f32 %v509_v33, %v177_v43  ;;  %v182_v46 = vrot.slane %v181_v44, 1 }
 0x1bd   :  { %v186_v47 = vmul.f32 1.442695, %v184_v45  ;;  %v183_v48 = vmax.f32 %v181_v44, %v182_v46 }
 0x1bf   :  { %512 = vpow2.f32 %v186_v47  ;;  %v185_v49 = vsub.f32 %v511_v36, %v183_v48 }
 0x1c1   :  { %v188_v50 = vmul.f32 1.442695, %v185_v49 }
 0x1c3   :  { %514 = vpow2.f32 %v188_v50 }
 0x1c9   :  { %v513_v51 = vpop.eup %512 }
 0x1ca   :  { %v190_v52 = vrot.slane %v513_v51, 4 }
 0x1cc   :  { %v191_v53 = vadd.f32 %v513_v51, %v190_v52 }
 0x1cd   :  { %v515_v54 = vpop.eup %514 }
 0x1ce   :  { %v192_v55 = vrot.slane %v191_v53, 2  ;;  %v196_v56 = vrot.slane %v515_v54, 4 }
 0x1d0   :  { %v193_v57 = vadd.f32 %v192_v55, %v191_v53  ;;  %v197_v58 = vadd.f32 %v515_v54, %v196_v56 }
 0x1d2   :  { %v194_v59 = vrot.slane %v193_v57, 1  ;;  %v198_v60 = vrot.slane %v197_v58, 2 }
 0x1d4   :  { %v195_v61 = vadd.f32 %v194_v59, %v193_v57  ;;  %v199_v62 = vadd.f32 %v198_v60, %v197_v58 }
 0x1d6   :  { %v200_v63 = vrot.slane %v199_v62, 1  ;;  %516 = vrcp.f32 %v195_v61 }
 0x1d8   :  { %v201_v0 = vadd.f32 %v200_v63, %v199_v62 }
 0x1da   :  { %518 = vrcp.f32 %v201_v0 }
 0x1e0   :  { %v517_v1 = vpop.eup %516 }
 0x1e1   :  { %v203_v2 = vmul.f32 %v517_v1, %v513_v51 }
 0x1e3   :  { %v206_v3 = vmul.f32 %v203_v2, %v685_v5 }
 0x1e4   :  { %v519_v4 = vpop.eup %518 }
 0x1e5   :  { %v205_v6 = vmul.f32 %v519_v4, %v515_v54  ;;  %v208_v8 = vsel %vm71_vm0, %v206_v3, 0.0 }
 0x1e6   :  { %v209_v9 = vrot.slane %v208_v8, 4 }
 0x1e7   :  { %v207_v10 = vmul.f32 %v205_v6, %v689_v7  ;;  %v312_v7 = vld [vmem:[%s743_s6 + $0x10] sm:$0xff]  ;;  %s603_s6 = smov [#allocation7]  }
 0x1e8   :  { %v210_v11 = vadd.f32 %v209_v9, %v208_v8  ;;  %v494_v24 = vpack.c.bf16 %v313_v23, %v312_v7  ;;  %s408_s5 = sshll.u32 %s603_s6, 4  ;;  %s409_s5 = int_to_ptr.vmem [resolvable:$true] %s408_s5 }
 0x1e9   :  { %v215_v12 = vsel %vm71_vm0, %v207_v10, 0.0  ;;  %s568_s29 = scalar_lea.vmem %s409_s5, 32  ;;  %p573_p3 = scmp.lt.s32.totalorder %s409_s5, %s409_s5 }
 0x1ea   :  { %v211_v13 = vrot.slane %v210_v11, 2  ;;  %v216_v14 = vrot.slane %v215_v12, 4  ;;  %495 = vmatpush3.bf16.msra.mxu0 %v494_v24  ;;  %p569_p2 = scmp.ne.s32.totalorder %s409_s5, %s568_s29  ;;  %p574_p4 = scmp.lt.s32.totalorder %s568_s29, %s568_s29 }
 0x1ec   :  { %v212_v15 = vadd.f32 %v211_v13, %v210_v11  ;;  %v217_v16 = vadd.f32 %v216_v14, %v215_v12  ;;  %p575_p5 = por %p574_p4, %p573_p3 }
 0x1ee   :  { %v218_v17 = vrot.slane %v217_v16, 2  ;;  %v213_v18 = vrot.slane %v212_v15, 1  ;;  %p576_p6 = pnand %p575_p5, %p569_p2 }
 0x1f0   :  { %v219_v19 = vadd.f32 %v218_v17, %v217_v16  ;;  %v214_v5 = vadd.f32 %v213_v18, %v212_v15 }
 0x1f2   :  { %v220_v20 = vrot.slane %v219_v19, 1 }
 0x1f4   :  { %v221_v21 = vadd.f32 %v220_v20, %v219_v19 }
 0x1f6   :  { %v236_v22 = vsel %vm235_vm2, %v221_v21, %v214_v5 }
 0x1f7   :  { %463 = vmatmul.mubr.msk.f32.vlgmr.msra.gmra.mrb[0].mxu1 %vm71_vm0, %v236_v22 }
 0x2ca   :  { %v305_v26 = vpop.f32.mrb[0].mxu1 }
 0x2cb   :  { %v306_v27 = vadd.f32 %v422_v25, %v305_v26  ;;  %v464_v28 = vpop.f32.mrb[1].mxu1 }
 0x2cd   :  { %v309_v29 = vmax.f32 %v306_v27, 0.0 }
 0x2cf   :  { %474 = vmatmul.mubr.msk.f32.vlgmr.msra.gmra.mrb[2].mxu0 %vm71_vm0, %v309_v29 }
 0x3a2   :  { %v390_v31 = vpop.f32.mrb[2].mxu0 }
 0x3a3   :  { %v391_v32 = vadd.f32 %v424_v30, %v390_v31  ;;  %v475_v33 = vpop.f32.mrb[3].mxu0 }
 0x3a5   :  { %v426_v34 = vmul.f32 -1.442695, %v391_v32 }
 0x3a7   :  { %520 = vpow2.f32 %v426_v34 }
 0x3b1   :  { %v521_v35 = vpop.eup %520 }
 0x3b2   :  { %v397_v36 = vadd.f32 1.0, %v521_v35 }
 0x3b4   :  { %522 = vrcp.f32 %v397_v36 }
 0x3be   :  { %v523_v37 = vpop.eup %522 }
 0x3bf   :  { %401 = vst.msk [vmem:[#allocation7] sm:$0x3] %vm400_vm3, %v523_v37 }
 0x3c0   :  { %579 = shalt.err (!%p576_p6)
}
 0x3c1   :  { %s580_s28 = scalar_lea.hbm %s745_s8, 32 }
 0x3c2   :  { %p581_p7 = scmp.ne.s32.totalorder %s745_s8, %s580_s28  ;;  %p584_p8 = scmp.lt.u32.totalorder %s580_s28, %s745_s8 }
 0x3c4   :  { %p586_p9 = pnand %p584_p8, %p581_p7 }
 0x3c6   :  { %589 = shalt.err (!%p586_p9)
}
 0x3c7   :  { %411 = dma.vmem_to_hbm [thread:$0]  %s409_s5, 32, %s745_s8, [#allocation4]  }
 0x3c8   :  { %594 = dma.done.wait [#allocation4], 32  }
 0x3c9   :  { %595 = vsyncadd [#allocation4], 4294967264 }
 0x3ca   :  { %415 = vsyncpa [#allocation3], 1 }
 0x3cb   :  { %416 = vsyncpa [#allocation6], 1 }
 0x3cc   :  { %417 = vsyncpa [#allocation4], 1 }

</bundles_post_ra>
